<compile_context>
chip_gen: v6e
topology: v6e:2x2x1
jax: 0.10.0
libtpu: 0.0.40
codegen_flags: <defaults>
</compile_context>

<pallas_src>
import functools
import math

import jax
import jax.numpy as jnp
from jax.experimental import pallas as pl
from jax.experimental.pallas import tpu as pltpu

_NEG_BIG = -1e30


def _round_up(x, m):
    return ((x + m - 1) // m) * m


@functools.lru_cache(maxsize=None)
def _device_kind():
    try:
        return jax.devices()[0].device_kind.lower()
    except Exception:
        return ""


@functools.lru_cache(maxsize=None)
def _tpu_generation():
    kind = _device_kind()
    if any(t in kind for t in ("v7", "7x", "tpu7")):
        return 7
    if any(t in kind for t in ("v6", "6e", "trillium")):
        return 6
    if any(t in kind for t in ("v5", "5e", "5p")):
        return 5
    if "v4" in kind:
        return 4
    return 0


def _vmem_limit_bytes():
    gen = _tpu_generation()
    if gen >= 7:
        return 48 * 1024 * 1024      # v7x: 64 MiB physical, leave compiler headroom
    if gen == 6:
        return 96 * 1024 * 1024      # v6e: 128 MiB physical
    if gen == 5:
        return 64 * 1024 * 1024      # v5e: 128 MiB physical, 16 MiB default scoped
    return None                      # unknown generation: compiler default


def _matmul_tile_targets():
    gen = _tpu_generation()
    if gen >= 6:                     # 2x256 MXU generations (v6e / v7x)
        return 1024, 512, 512        # tm, tk, tn
    if gen == 5:
        return 512, 512, 512
    return 512, 256, 256


def _attn_vmem_budget():
    gen = _tpu_generation()
    if gen >= 7:
        return 28 << 20
    if gen == 6:
        return 48 << 20
    if gen == 5:
        return 32 << 20
    return 16 << 20


def _attn_tiles(C, D, n_head):
    """Pick (blk_q, blk_kv) so the attention working set fits the VMEM budget."""
    budget = _attn_vmem_budget()

    def usage(bq, bkv):
        q_io = 2 * bq * C * 2               # q block, double-buffered, bf16
        kv_io = 2 * 2 * bkv * C * 2         # k + v blocks, double-buffered, bf16
        o_io = 2 * bq * C * 2               # output block
        tabs = 2 * 2 * (bq + bkv) * D * 4   # cos/sin tables, f32, double-buffered
        scr = bq * C * 2 + bq * C * 4 + 2 * n_head * bq * 4
        return q_io + kv_io + o_io + tabs + scr

    blk_q, blk_kv = 256, 512
    while blk_kv > 128 and usage(blk_q, blk_kv) > budget:
        blk_kv //= 2
    while blk_q > 64 and usage(blk_q, blk_kv) > budget:
        blk_q //= 2
    return blk_q, blk_kv


# ----------------------------------------------------------------------------
# Linear: tiled matmul + bias (+ fused GELU) (+ fused residual add)
# ----------------------------------------------------------------------------
def _linear_kernel(x_ref, w_ref, b_ref, *rest, activation, has_residual):
    if has_residual:
        res_ref, o_ref, acc_ref = rest
    else:
        o_ref, acc_ref = rest

    @pl.when(pl.program_id(2) == 0)
    def _():
        acc_ref[...] = jnp.zeros_like(acc_ref)

    acc_ref[...] += jnp.dot(x_ref[...], w_ref[...],
                            preferred_element_type=jnp.float32)

    @pl.when(pl.program_id(2) == pl.num_programs(2) - 1)
    def _():
        y = acc_ref[...] + b_ref[...].astype(jnp.float32)
        if activation == "gelu":
            c = math.sqrt(2.0 / math.pi)
            y = 0.5 * y * (1.0 + jnp.tanh(c * (y + 0.044715 * y * y * y)))
        if has_residual:
            y = y + res_ref[...].astype(jnp.float32)
        o_ref[...] = y.astype(o_ref.dtype)


def linear(x, w, b, activation=None, residual=None, out_dtype=jnp.bfloat16):
    """x:(...,K) @ w:(K,N) + b (+gelu) (+residual) -> (...,N). bf16 MXU, f32 acc."""
    orig_shape = x.shape
    K = orig_shape[-1]
    M = math.prod(orig_shape[:-1])
    N = w.shape[1]

    tm_t, tk_t, tn_t = _matmul_tile_targets()
    tm = min(tm_t, _round_up(M, 8))
    tk = min(tk_t, _round_up(K, 128))
    tn = min(tn_t, _round_up(N, 128))
    Mp, Kp, Np = _round_up(M, tm), _round_up(K, tk), _round_up(N, tn)

    x2 = x.reshape(M, K)
    if x2.dtype != jnp.bfloat16:
        x2 = x2.astype(jnp.bfloat16)
    w2 = w if w.dtype == jnp.bfloat16 else w.astype(jnp.bfloat16)
    b2 = b.reshape(1, N).astype(jnp.float32)
    if (Mp, Kp) != (M, K):
        x2 = jnp.pad(x2, ((0, Mp - M), (0, Kp - K)))
    if (Kp, Np) != (K, N):
        w2 = jnp.pad(w2, ((0, Kp - K), (0, Np - N)))
    if Np != N:
        b2 = jnp.pad(b2, ((0, 0), (0, Np - N)))

    in_specs = [
        pl.BlockSpec((tm, tk), lambda i, j, k: (i, k)),
        pl.BlockSpec((tk, tn), lambda i, j, k: (k, j)),
        pl.BlockSpec((1, tn), lambda i, j, k: (0, j)),
    ]
    operands = [x2, w2, b2]
    has_residual = residual is not None
    if has_residual:
        r2 = residual.reshape(M, N)
        if r2.dtype != jnp.bfloat16:
            r2 = r2.astype(jnp.bfloat16)
        if (Mp, Np) != (M, N):
            r2 = jnp.pad(r2, ((0, Mp - M), (0, Np - N)))
        in_specs.append(pl.BlockSpec((tm, tn), lambda i, j, k: (i, j)))
        operands.append(r2)

    out = pl.pallas_call(
        functools.partial(_linear_kernel, activation=activation,
                          has_residual=has_residual),
        out_shape=jax.ShapeDtypeStruct((Mp, Np), out_dtype),
        grid=(Mp // tm, Np // tn, Kp // tk),
        in_specs=in_specs,
        out_specs=pl.BlockSpec((tm, tn), lambda i, j, k: (i, j)),
        scratch_shapes=[pltpu.VMEM((tm, tn), jnp.float32)],
        compiler_params=pltpu.CompilerParams(
            dimension_semantics=("parallel", "parallel", "arbitrary"),
            vmem_limit_bytes=_vmem_limit_bytes()),
        cost_estimate=pl.CostEstimate(
            flops=2 * M * K * N,
            transcendentals=(M * N if activation == "gelu" else 0),
            bytes_accessed=(M * K + K * N) * 2 + M * N * 2
                           + (M * N * 2 if has_residual else 0) + N * 4),
    )(*operands)
    if (Mp, Np) != (M, N):
        out = out[:M, :N]
    return out.reshape(orig_shape[:-1] + (N,))


# ----------------------------------------------------------------------------
# LayerNorm: row-tiled, budget-sized tiles, bf16 in/out, f32 stats
# ----------------------------------------------------------------------------
def _layernorm_kernel(x_ref, g_ref, b_ref, o_ref, *, eps):
    x = x_ref[...].astype(jnp.float32)
    mean = jnp.mean(x, axis=-1, keepdims=True)
    xc = x - mean
    var = jnp.mean(xc * xc, axis=-1, keepdims=True)
    y = xc * jax.lax.rsqrt(var + eps)
    o_ref[...] = (y * g_ref[...] + b_ref[...]).astype(o_ref.dtype)


def layernorm(x, g, b, eps=1e-5):
    orig_shape = x.shape
    C = orig_shape[-1]
    M = math.prod(orig_shape[:-1])
    # bf16 in + bf16 out, both double-buffered -> ~8*C bytes per pipelined row.
    budget = 8 << 20
    tm_target = max(8, min(2048, (budget // (8 * C)) // 8 * 8))
    tm = min(tm_target, _round_up(M, 8))
    Mp = _round_up(M, tm)

    x2 = x.reshape(M, C)
    if x2.dtype != jnp.bfloat16:
        x2 = x2.astype(jnp.bfloat16)
    if Mp != M:
        x2 = jnp.pad(x2, ((0, Mp - M), (0, 0)))

    out = pl.pallas_call(
        functools.partial(_layernorm_kernel, eps=eps),
        out_shape=jax.ShapeDtypeStruct((Mp, C), jnp.bfloat16),
        grid=(Mp // tm,),
        in_specs=[
            pl.BlockSpec((tm, C), lambda i: (i, 0)),
            pl.BlockSpec((1, C), lambda i: (0, 0)),
            pl.BlockSpec((1, C), lambda i: (0, 0)),
        ],
        out_specs=pl.BlockSpec((tm, C), lambda i: (i, 0)),
        compiler_params=pltpu.CompilerParams(
            dimension_semantics=("parallel",),
            vmem_limit_bytes=_vmem_limit_bytes()),
    )(x2, g.reshape(1, C).astype(jnp.float32), b.reshape(1, C).astype(jnp.float32))
    if Mp != M:
        out = out[:M]
    return out.reshape(orig_shape)


# ----------------------------------------------------------------------------
# Attention: flash-style online softmax, fused GPT-J RoPE, q-tiled
# ----------------------------------------------------------------------------
def _rotate_every_two(x):
    # y[..., 2i] = -x[..., 2i+1];  y[..., 2i+1] = x[..., 2i]
    n = x.shape[-1]
    ax = x.ndim - 1
    lane = jax.lax.broadcasted_iota(jnp.int32, x.shape, ax)
    nxt = pltpu.roll(x, n - 1, ax)   # element j+1 lands at j
    prv = pltpu.roll(x, 1, ax)       # element j-1 lands at j
    return jnp.where((lane % 2) == 0, -nxt, prv)


def _tile_heads(c, n_head):
    # (blk, D) -> (blk, n_head*D): same table repeated per head (cheap in-VMEM).
    return c if n_head == 1 else jnp.concatenate([c] * n_head, axis=-1)


def _attn_kernel(q_ref, k_ref, v_ref, cq_ref, sq_ref, ck_ref, sk_ref, o_ref,
                 qr_ref, m_ref, l_ref, acc_ref,
                 *, n_head, d_head, scale, causal, s_len):
    q_idx = pl.program_id(1)
    kv_idx = pl.program_id(2)
    blk_q = q_ref.shape[1]
    blk_kv = k_ref.shape[1]

    @pl.when(kv_idx == 0)
    def _init():
        q = q_ref[0].astype(jnp.float32)
        cos = _tile_heads(cq_ref[...], n_head)
        sin = _tile_heads(sq_ref[...], n_head)
        qr = (q * cos + _rotate_every_two(q) * sin) * scale   # scale folded in once
        qr_ref[...] = qr.astype(qr_ref.dtype)
        m_ref[...] = jnp.full_like(m_ref, _NEG_BIG)
        l_ref[...] = jnp.zeros_like(l_ref)
        acc_ref[...] = jnp.zeros_like(acc_ref)

    def _process():
        k = k_ref[0].astype(jnp.float32)
        cos = _tile_heads(ck_ref[...], n_head)
        sin = _tile_heads(sk_ref[...], n_head)
        kr = (k * cos + _rotate_every_two(k) * sin).astype(jnp.bfloat16)
        v = v_ref[0]
        qr = qr_ref[...]

        row = jax.lax.broadcasted_iota(jnp.int32, (blk_q, blk_kv), 0) + q_idx * blk_q
        col = jax.lax.broadcasted_iota(jnp.int32, (blk_q, blk_kv), 1) + kv_idx * blk_kv
        mask = col < s_len
        if causal:
            mask = jnp.logical_and(mask, col <= row)

        for h in range(n_head):
            sl = slice(h * d_head, (h + 1) * d_head)
            # Contract the head dims directly (no k transpose before the MXU).
            s = jax.lax.dot_general(qr[:, sl], kr[:, sl], (((1,), (1,)), ((), ())),
                                    preferred_element_type=jnp.float32)
            m_prev = m_ref[h]                                   # (blk_q, 1)
            m_new = jnp.maximum(m_prev, jnp.max(s, axis=-1, keepdims=True))
            p = jnp.where(mask, jnp.exp(s - m_new), 0.0)        # single select masks p
            alpha = jnp.exp(m_prev - m_new)
            l_ref[h] = alpha * l_ref[h] + jnp.sum(p, axis=-1, keepdims=True)
            acc_ref[:, sl] = alpha * acc_ref[:, sl] + jnp.dot(
                p.astype(jnp.bfloat16), v[:, sl], preferred_element_type=jnp.float32)
            m_ref[h] = m_new

    if causal:
        # Skip KV blocks that lie entirely above the causal diagonal.
        @pl.when(kv_idx * blk_kv < (q_idx + 1) * blk_q)
        def _():
            _process()
    else:
        _process()

    @pl.when(kv_idx == pl.num_programs(2) - 1)
    def _finish():
        scales = []
        for h in range(n_head):
            l_h = l_ref[h]
            inv = pl.reciprocal(jnp.where(l_h > 0.0, l_h, 1.0), approx=True)
            scales.append(jnp.broadcast_to(inv, (blk_q, d_head)))
        o_ref[0] = (acc_ref[...] * jnp.concatenate(scales, axis=-1)).astype(o_ref.dtype)


def attention(q, k, v, cos_q, sin_q, cos_k, sin_k, n_head, causal):
    """q:(B,T,C), k/v:(B,S,C), cos/sin:(T,D)/(S,D). RoPE + flash softmax fused."""
    B, T, C = q.shape
    S = k.shape[1]
    D = C // n_head
    scale = 1.0 / math.sqrt(D)

    bq_t, bkv_t = _attn_tiles(C, D, n_head)
    blk_q = min(bq_t, _round_up(T, 8))
    blk_kv = min(bkv_t, _round_up(S, 8))
    Tp, Sp = _round_up(T, blk_q), _round_up(S, blk_kv)

    def pad_seq(a, L):
        a = a if a.dtype == jnp.bfloat16 else a.astype(jnp.bfloat16)
        if a.shape[1] == L:
            return a
        return jnp.pad(a, ((0, 0), (0, L - a.shape[1]), (0, 0)))

    qp, kp, vp = pad_seq(q, Tp), pad_seq(k, Sp), pad_seq(v, Sp)

    def pad_tab(c, L):
        c = c.astype(jnp.float32)
        if c.shape[0] == L:
            return c
        return jnp.pad(c, ((0, L - c.shape[0]), (0, 0)))

    cq, sq = pad_tab(cos_q, Tp), pad_tab(sin_q, Tp)
    ck, sk = pad_tab(cos_k, Sp), pad_tab(sin_k, Sp)

    if causal:
        # Clamp the kv block index so DMAs for skipped (fully-masked) blocks
        # simply re-use the previously fetched block (no new HBM traffic).
        def kv_map(b, qi, ki):
            return (b, jnp.minimum(ki, ((qi + 1) * blk_q - 1) // blk_kv), 0)

        def kv_tab_map(b, qi, ki):
            return (jnp.minimum(ki, ((qi + 1) * blk_q - 1) // blk_kv), 0)
    else:
        def kv_map(b, qi, ki):
            return (b, ki, 0)

        def kv_tab_map(b, qi, ki):
            return (ki, 0)

    grid = (B, Tp // blk_q, Sp // blk_kv)
    out = pl.pallas_call(
        functools.partial(_attn_kernel, n_head=n_head, d_head=D, scale=scale,
                          causal=causal, s_len=S),
        out_shape=jax.ShapeDtypeStruct((B, Tp, C), jnp.bfloat16),
        grid=grid,
        in_specs=[
            pl.BlockSpec((1, blk_q, C), lambda b, qi, ki: (b, qi, 0)),
            pl.BlockSpec((1, blk_kv, C), kv_map),
            pl.BlockSpec((1, blk_kv, C), kv_map),
            pl.BlockSpec((blk_q, D), lambda b, qi, ki: (qi, 0)),
            pl.BlockSpec((blk_q, D), lambda b, qi, ki: (qi, 0)),
            pl.BlockSpec((blk_kv, D), kv_tab_map),
            pl.BlockSpec((blk_kv, D), kv_tab_map),
        ],
        out_specs=pl.BlockSpec((1, blk_q, C), lambda b, qi, ki: (b, qi, 0)),
        scratch_shapes=[
            pltpu.VMEM((blk_q, C), jnp.bfloat16),         # roped + pre-scaled q
            pltpu.VMEM((n_head, blk_q, 1), jnp.float32),  # running max
            pltpu.VMEM((n_head, blk_q, 1), jnp.float32),  # running denom
            pltpu.VMEM((blk_q, C), jnp.float32),          # lane-dense accumulator
        ],
        compiler_params=pltpu.CompilerParams(
            dimension_semantics=("parallel", "parallel", "arbitrary"),
            vmem_limit_bytes=_vmem_limit_bytes()),
        cost_estimate=pl.CostEstimate(
            flops=(4 * B * T * S * C) // (2 if causal else 1),
            transcendentals=B * n_head * T * S,
            bytes_accessed=2 * B * (Tp + 2 * Sp) * C + 2 * B * Tp * C
                           + 8 * (Tp + Sp) * D),
    )(qp, kp, vp, cq, sq, ck, sk)
    if Tp != T:
        out = out[:, :T, :]
    return out


# ----------------------------------------------------------------------------
# RoPE cos/sin tables: (seq, D), computed once per sequence length
# ----------------------------------------------------------------------------
def rotary_cos_sin(seq_len, dim, base=10000.0):
    inv_freq = 1.0 / (base ** (jnp.arange(0, dim, 2, dtype=jnp.float32) / dim))
    t = jnp.arange(seq_len, dtype=jnp.float32)
    freqs = jnp.einsum("i,j->ij", t, inv_freq)      # (seq, dim//2)
    emb = jnp.repeat(freqs, 2, axis=-1)             # 'n -> (n j)', j=2
    return jnp.cos(emb), jnp.sin(emb)               # (seq, dim)


# ----------------------------------------------------------------------------
# Model blocks (residual add fused into the proj matmul epilogue)
# ----------------------------------------------------------------------------
def mlp(x, p, residual):
    h = linear(x, p["c_fc_w"], p["c_fc_b"], activation="gelu")
    return linear(h, p["c_proj_w"], p["c_proj_b"], residual=residual)
    # TODO(synk): dropout is identity at p=0 / eval; not implemented as a kernel.


def self_attention(x, p, n_head, rope, causal, residual):
    qkv = linear(x, p["c_attn_w"], p["c_attn_b"])
    # TODO(synk): q/k/v split kept as plain JAX glue; BlockSpec offsetting into
    # the 3C axis needs C % 128 == 0, which the small test config violates.
    q, k, v = jnp.split(qkv, 3, axis=-1)
    cos, sin = rope
    y = attention(q, k, v, cos, sin, cos, sin, n_head, causal)
    return linear(y, p["c_proj_w"], p["c_proj_b"], residual=residual)


def cross_attention(x, m, p, n_head, rope_q, rope_k, residual):
    q = linear(x, p["q_attn_w"], p["q_attn_b"])
    kv = linear(m, p["kv_attn_w"], p["kv_attn_b"])
    k, v = jnp.split(kv, 2, axis=-1)
    y = attention(q, k, v, rope_q[0], rope_q[1], rope_k[0], rope_k[1],
                  n_head, causal=False)
    return linear(y, p["c_proj_w"], p["c_proj_b"], residual=residual)


def encoder_block(x, p, n_head, rope):
    x = self_attention(layernorm(x, p["ln1_g"], p["ln1_b"]), p["attn"],
                       n_head, rope, causal=False, residual=x)
    x = mlp(layernorm(x, p["ln2_g"], p["ln2_b"]), p["mlp"], residual=x)
    return x


def decoder_block(x, m, p, n_head, rope_tgt, rope_src):
    x = self_attention(layernorm(x, p["ln1_g"], p["ln1_b"]), p["self_attn"],
                       n_head, rope_tgt, causal=True, residual=x)
    x = cross_attention(layernorm(x, p["ln2_g"], p["ln2_b"]), m, p["cross_attn"],
                        n_head, rope_tgt, rope_src, residual=x)
    x = mlp(layernorm(x, p["ln3_g"], p["ln3_b"]), p["mlp"], residual=x)
    return x


def ropeformer_forward(params, src, tgt, cfg):
    n_head, n_layer = cfg["n_head"], cfg["n_layer"]
    C = cfg["n_embd"]
    D = C // n_head
    x = params["src_emb"][src]   # (B, S, C) bf16 (embedding gather: plain JAX)
    y = params["tgt_emb"][tgt]   # (B, T, C) bf16
    S, T = src.shape[1], tgt.shape[1]
    rope_src = rotary_cos_sin(S, D)   # hoisted: computed once for all layers
    rope_tgt = rotary_cos_sin(T, D)
    for i in range(n_layer):
        x = encoder_block(x, params["enc"][i], n_head, rope_src)
    for i in range(n_layer):
        y = decoder_block(y, x, params["dec"][i], n_head, rope_tgt, rope_src)
    y = layernorm(y, params["ln_f_g"], params["ln_f_b"])
    return linear(y, params["lm_head_w"], params["lm_head_b"],
                  out_dtype=jnp.float32)  # (B, T, vocab)


# ----------------------------------------------------------------------------
# Parameter init (std=0.02 normal; weights/embeddings pre-cast to bf16 ONCE here
# so the forward pass never re-casts/re-reads them, biases & LN stay f32)
# ----------------------------------------------------------------------------
def init_params(key, cfg):
    C, V, L = cfg["n_embd"], cfg["vocab_size"], cfg["n_layer"]
    keys = iter(jax.random.split(key, 1024))

    def w(shape):
        return (0.02 * jax.random.normal(next(keys), shape)).astype(jnp.bfloat16)

    def zeros(shape):
        return jnp.zeros(shape, jnp.float32)

    def ones(shape):
        return jnp.ones(shape, jnp.float32)

    def attn_params():
        return {"c_attn_w": w((C, 3 * C)), "c_attn_b": zeros((3 * C,)),
                "c_proj_w": w((C, C)), "c_proj_b": zeros((C,))}

    def cross_params():
        return {"q_attn_w": w((C, C)), "q_attn_b": zeros((C,)),
                "kv_attn_w": w((C, 2 * C)), "kv_attn_b": zeros((2 * C,)),
                "c_proj_w": w((C, C)), "c_proj_b": zeros((C,))}

    def mlp_params():
        return {"c_fc_w": w((C, 4 * C)), "c_fc_b": zeros((4 * C,)),
                "c_proj_w": w((4 * C, C)), "c_proj_b": zeros((C,))}

    def enc_block():
        return {"ln1_g": ones((C,)), "ln1_b": zeros((C,)),
                "ln2_g": ones((C,)), "ln2_b": zeros((C,)),
                "attn": attn_params(), "mlp": mlp_params()}

    def dec_block():
        return {"ln1_g": ones((C,)), "ln1_b": zeros((C,)),
                "ln2_g": ones((C,)), "ln2_b": zeros((C,)),
                "ln3_g": ones((C,)), "ln3_b": zeros((C,)),
                "self_attn": attn_params(), "cross_attn": cross_params(),
                "mlp": mlp_params()}

    return {
        "src_emb": w((V, C)),
        "tgt_emb": w((V, C)),
        "enc": [enc_block() for _ in range(L)],
        "dec": [dec_block() for _ in range(L)],
        "ln_f_g": ones((C,)), "ln_f_b": zeros((C,)),
        "lm_head_w": w((C, V)), "lm_head_b": zeros((V,)),
    }


# ----------------------------------------------------------------------------
if __name__ == "__main__":
    cfg = dict(vocab_size=64, n_embd=32, n_head=4, n_layer=2,
               dropout=0.0, bias=True, pad_idx=0)
    B, S, T = 2, 8, 8

    key = jax.random.PRNGKey(0)
    k_param, k_src, k_tgt = jax.random.split(key, 3)
    params = init_params(k_param, cfg)
    src = jax.random.randint(k_src, (B, S), 0, cfg["vocab_size"])
    tgt = jax.random.randint(k_tgt, (B, T), 0, cfg["vocab_size"])

    logits = ropeformer_forward(params, src, tgt, cfg)
    jax.block_until_ready(logits)
    assert logits.shape == (B, T, cfg["vocab_size"])
    assert bool(jnp.all(jnp.isfinite(logits)))
    print("KERNEL_OK")
</pallas_src>

<mosaic_0001>
module attributes {stable_mosaic.version = 11 : i64} {
  func.func @_layernorm_kernel(%arg0: i32, %arg1: memref<16x32xbf16, #tpu.memory_space<vmem>>, %arg2: memref<1x32xf32, #tpu.memory_space<vmem>>, %arg3: memref<1x32xf32, #tpu.memory_space<vmem>>, %arg4: memref<16x32xbf16, #tpu.memory_space<vmem>>) attributes {dimension_semantics = [#tpu.dimension_semantics<parallel>], iteration_bounds = array<i64: 1>, scalar_prefetch = 0 : i64, scratch_operands = 0 : i64, tpu.core_type = #tpu.core_type<tc>, window_params = [{transform_indices = @transform_0, window_bounds = array<i64: 16, 32>}, {pipeline_mode = #tpu.pipeline_mode<synchronous>, transform_indices = @transform_1, window_bounds = array<i64: 1, 32>}, {pipeline_mode = #tpu.pipeline_mode<synchronous>, transform_indices = @transform_2, window_bounds = array<i64: 1, 32>}, {transform_indices = @transform_3, window_bounds = array<i64: 16, 32>}]} {
    %c0 = arith.constant 0 : index
    %c0_0 = arith.constant 0 : index
    %0 = vector.load %arg1[%c0, %c0_0] : memref<16x32xbf16, #tpu.memory_space<vmem>>, vector<16x32xbf16>
    %1 = arith.extf %0 : vector<16x32xbf16> to vector<16x32xf32>
    %cst = arith.constant dense<0.000000e+00> : vector<16xf32>
    %2 = vector.multi_reduction <add>, %1, %cst [1] : vector<16x32xf32> to vector<16xf32>
    %3 = vector.shape_cast %2 : vector<16xf32> to vector<16x1xf32>
    %cst_1 = arith.constant 3.200000e+01 : f32
    %4 = vector.broadcast %cst_1 : f32 to vector<16x1xf32>
    %5 = arith.divf %3, %4 : vector<16x1xf32>
    %6 = vector.broadcast %5 : vector<16x1xf32> to vector<16x32xf32>
    %7 = arith.subf %1, %6 : vector<16x32xf32>
    %8 = arith.mulf %7, %7 : vector<16x32xf32>
    %cst_2 = arith.constant dense<0.000000e+00> : vector<16xf32>
    %9 = vector.multi_reduction <add>, %8, %cst_2 [1] : vector<16x32xf32> to vector<16xf32>
    %10 = vector.shape_cast %9 : vector<16xf32> to vector<16x1xf32>
    %cst_3 = arith.constant 3.200000e+01 : f32
    %11 = vector.broadcast %cst_3 : f32 to vector<16x1xf32>
    %12 = arith.divf %10, %11 : vector<16x1xf32>
    %cst_4 = arith.constant 9.99999974E-6 : f32
    %13 = vector.broadcast %cst_4 : f32 to vector<16x1xf32>
    %14 = arith.addf %12, %13 : vector<16x1xf32>
    %15 = math.rsqrt %14 : vector<16x1xf32>
    %16 = vector.broadcast %15 : vector<16x1xf32> to vector<16x32xf32>
    %17 = arith.mulf %7, %16 : vector<16x32xf32>
    %c0_5 = arith.constant 0 : index
    %c0_6 = arith.constant 0 : index
    %18 = vector.load %arg2[%c0_5, %c0_6] : memref<1x32xf32, #tpu.memory_space<vmem>>, vector<1x32xf32>
    %19 = vector.broadcast %18 : vector<1x32xf32> to vector<16x32xf32>
    %20 = arith.mulf %17, %19 : vector<16x32xf32>
    %c0_7 = arith.constant 0 : index
    %c0_8 = arith.constant 0 : index
    %21 = vector.load %arg3[%c0_7, %c0_8] : memref<1x32xf32, #tpu.memory_space<vmem>>, vector<1x32xf32>
    %22 = vector.broadcast %21 : vector<1x32xf32> to vector<16x32xf32>
    %23 = arith.addf %20, %22 : vector<16x32xf32>
    %24 = arith.truncf %23 : vector<16x32xf32> to vector<16x32xbf16>
    %c0_9 = arith.constant 0 : index
    %c0_10 = arith.constant 0 : index
    %25 = vector.load %arg4[%c0_9, %c0_10] : memref<16x32xbf16, #tpu.memory_space<vmem>>, vector<16x32xbf16>
    tpu.vector_store %arg4[%c0_9, %c0_10], %24 {strides = array<i32>} : memref<16x32xbf16, #tpu.memory_space<vmem>>, vector<16x32xbf16>,
    return
  }
  func.func @transform_0(%arg0: i32) -> (i32, i32) {
    %c0_i32 = arith.constant 0 : i32
    %c0_i32_0 = arith.constant 0 : i32
    return %arg0, %c0_i32 : i32, i32
  }
  func.func @transform_1(%arg0: i32) -> (i32, i32) {
    %c0_i32 = arith.constant 0 : i32
    %c0_i32_0 = arith.constant 0 : i32
    %c0_i32_1 = arith.constant 0 : i32
    return %c0_i32, %c0_i32_0 : i32, i32
  }
  func.func @transform_2(%arg0: i32) -> (i32, i32) {
    %c0_i32 = arith.constant 0 : i32
    %c0_i32_0 = arith.constant 0 : i32
    %c0_i32_1 = arith.constant 0 : i32
    return %c0_i32, %c0_i32_0 : i32, i32
  }
  func.func @transform_3(%arg0: i32) -> (i32, i32) {
    %c0_i32 = arith.constant 0 : i32
    %c0_i32_0 = arith.constant 0 : i32
    return %arg0, %c0_i32 : i32, i32
  }
}

</mosaic_0001>

<bundles_post_ra>
// kernel: tpu_custom_call.1
= control target key start
LH: loop header
LB: loop body
LE: loop exit
PB: predicated region body
PF: predicated region fallthrough
CT: control target
= control target key end

     0   :  { %8 = vsyncpa [#allocation3], 0  ;;  %s215_s0 = inlined_call_operand.hbm [shape: bf16[16,32], index: 0, kind: input, shape index: {}]   ;;  %s216_s1 = inlined_call_operand.vmem [shape: f32[1,32], index: 1, kind: input, shape index: {}]   ;;  %s217_s2 = inlined_call_operand.vmem [shape: f32[1,32], index: 2, kind: input, shape index: {}]   ;;  %s218_s3 = inlined_call_operand.hbm [shape: bf16[16,32], index: 3, kind: output, shape index: {}]  }
   0x1   :  { %9 = vsyncpa [#allocation4], 0  ;;  %s169_s12 = smov [#allocation2]  }
   0x2   :  { %s15_s13 = sshll.u32 %s169_s12, 4  ;;  %s16_s13 = int_to_ptr.vmem [resolvable:$true] %s15_s13 }
   0x3   :  { %s133_s14 = scalar_lea.vmem %s16_s13, 128  ;;  %p138_p1 = scmp.lt.s32.totalorder %s16_s13, %s16_s13 }
   0x4   :  { %p134_p0 = scmp.ne.s32.totalorder %s16_s13, %s133_s14  ;;  %p139_p2 = scmp.lt.s32.totalorder %s133_s14, %s133_s14 }
   0x6   :  { %p140_p3 = por %p139_p2, %p138_p1 }
   0x8   :  { %p141_p4 = pnand %p140_p3, %p134_p0 }
   0xa   :  { %144 = shalt.err (!%p141_p4)
}
   0xb   :  { %s170_s15 = smov 64   ;;  %s171_s16 = smov 4  }
   0xc   :  { %21 = dma.hbm_to_vmem [thread:$0]  %s215_s0, 128, %s16_s13, [#allocation3], %s170_s15, %s170_s15, %s171_s16  }
   0xd   :  { %165 = dma.done.wait [#allocation3], 128  }
   0xe   :  { %166 = vsyncadd [#allocation3], 4294967168  ;;  %v114_v0 = vld [vmem:[#allocation2] sm:$0xff]   ;;  %vm33_vm0 = vcmask 261120   ;;  %vm87_vm1 = vcmask 257024   ;;  %s172_s22 = smov [#allocation5]  }
   0xf   :  { %v115_v1 = vunpack.c.l.bf16 %v114_v0  ;;  %v116_v2 = vunpack.c.h.bf16 %v114_v0  ;;  %v107_v22 = vld [vmem:[%s216_s1] ss:$0 sm:$0xff]  ;;  %s95_s23 = sshll.u32 %s172_s22, 4  ;;  %s96_s23 = int_to_ptr.vmem [resolvable:$true] %s95_s23 }
  0x10   :  { %v108_v24 = vld [vmem:[%s217_s2] ss:$0 sm:$0xff]  ;;  %s145_s1 = scalar_lea.vmem %s96_s23, 128  ;;  %p150_p6 = scmp.lt.s32.totalorder %s96_s23, %s96_s23 }
  0x11   :  { %v34_v3 = vsel %vm33_vm0, %v115_v1, 0.0  ;;  %v37_v4 = vsel %vm33_vm0, %v116_v2, 0.0  ;;  %p146_p5 = scmp.ne.s32.totalorder %s96_s23, %s145_s1  ;;  %p151_p7 = scmp.lt.s32.totalorder %s145_s1, %s145_s1 }
  0x12   :  { %35 = vadd.xlane.f32.xlu0 %v34_v3 }
  0x13   :  { %p152_p8 = por %p151_p7, %p150_p6 }
  0x15   :  { %p153_p9 = pnand %p152_p8, %p146_p5 }
  0x16   :  { %38 = vadd.xlane.f32.xlu0 %v37_v4 }
  0x9b   :  { %v36_v5 = vpop.xlane.xlu0 %35 }
  0x9c   :  { %v41_v6 = vmul.f32 0.03125, %v36_v5 }
  0x9e   :  { %v43_v7 = vsub.f32 %v115_v1, %v41_v6 }
  0x9f   :  { %v39_v8 = vpop.xlane.xlu0 %38 }
  0xa0   :  { %v42_v9 = vmul.f32 0.03125, %v39_v8  ;;  %v45_v10 = vmul.f32 %v43_v7, %v43_v7 }
  0xa2   :  { %v44_v11 = vsub.f32 %v116_v2, %v42_v9  ;;  %v47_v12 = vsel %vm33_vm0, %v45_v10, 0.0 }
  0xa3   :  { %48 = vadd.xlane.f32.xlu1 %v47_v12 }
  0xa4   :  { %v46_v13 = vmul.f32 %v44_v11, %v44_v11 }
  0xa6   :  { %v50_v14 = vsel %vm33_vm0, %v46_v13, 0.0 }
  0xa7   :  { %51 = vadd.xlane.f32.xlu1 %v50_v14 }
 0x12c   :  { %v49_v15 = vpop.xlane.xlu1 %48 }
 0x12d   :  { %v53_v16 = vmul.f32 0.03125, %v49_v15 }
 0x12f   :  { %v55_v17 = vadd.f32 1e-05, %v53_v16 }
 0x130   :  { %v52_v18 = vpop.xlane.xlu1 %51 }
 0x131   :  { %121 = vrsqrt.f32 %v55_v17  ;;  %v54_v19 = vmul.f32 0.03125, %v52_v18 }
 0x133   :  { %v56_v20 = vadd.f32 1e-05, %v54_v19 }
 0x135   :  { %123 = vrsqrt.f32 %v56_v20 }
 0x13e   :  { %v122_v21 = vpop.eup %121 }
 0x13f   :  { %v59_v23 = vmul.f32 %v122_v21, %v43_v7 }
 0x141   :  { %v68_v25 = vmul.f32 %v107_v22, %v59_v23 }
 0x142   :  { %v124_v26 = vpop.eup %123 }
 0x143   :  { %v60_v27 = vmul.f32 %v124_v26, %v44_v11  ;;  %v77_v28 = vadd.f32 %v108_v24, %v68_v25 }
 0x145   :  { %v69_v29 = vmul.f32 %v107_v22, %v60_v27  ;;  %v111_v30 = vpack.c.bf16 %v77_v28, %v77_v28 }
 0x147   :  { %v78_v31 = vadd.f32 %v108_v24, %v69_v29  ;;  %88 = vst.msk [vmem:[#allocation5] sm:$0xf] %vm87_vm1, %v111_v30 }
 0x149   :  { %v112_v32 = vpack.c.bf16 %v78_v31, %v78_v31 }
 0x14b   :  { %89 = vst.msk [vmem:[#allocation5 + $0x4] sm:$0xf] %vm87_vm1, %v112_v32 }
 0x14c   :  { %156 = shalt.err (!%p153_p9)
}
 0x14d   :  { %101 = dma.vmem_to_hbm [thread:$0]  %s96_s23, 128, %s218_s3, [#allocation4], %s170_s15, %s170_s15, %s171_s16  }
 0x14e   :  { %167 = dma.done.wait [#allocation4], 128  }
 0x14f   :  { %168 = vsyncadd [#allocation4], 4294967168 }
 0x150   :  { %105 = vsyncpa [#allocation3], 1 }
 0x151   :  { %106 = vsyncpa [#allocation4], 1 }

</bundles_post_ra>
